<compile_context>
chip_gen: v5e
topology: v5e:2x2
jax: 0.10.0
libtpu: 0.0.40
codegen_flags: <defaults>
</compile_context>

<pallas_src>
import jax
import jax.numpy as jnp
import numpy as np
from jax import lax
from jax.experimental import pallas as pl
from jax.experimental.pallas import tpu as pltpu


def _make_splat_kernel(BB, S, scale, chunks):
    """Build the kernel for a (BB, C, N) input block -> (BB, S, S) output block."""
    n_chunks = len(chunks)

    def kernel(x_ref, out_ref):
        # x_ref  : (BB, C, N) float32  raw (unscaled) point cloud block
        # out_ref: (BB, S, S) float32  splatted images
        # Hoist the chunk-size-dependent row-index iotas out of all loops.
        iota = {cn: lax.broadcasted_iota(jnp.int32, (S, cn), 0)
                for cn in sorted({cn for _, cn in chunks})}

        def load_xy(i, c0, cn):
            # Fold the wrapper's `x[:, :2] * (size2d//2 - 2)` into the kernel (VPU slack).
            return x_ref[i, 0:2, c0:c0 + cn] * scale          # (2, cn) float32

        # Unrolled loop over the BB batch elements handled by this grid step.
        for i in range(BB):
            # ---- pass 1: GLOBAL (per batch element) min of the int coords --------
            # Must span all point chunks, so it cannot be fused into the per-chunk splat.
            xy0 = load_xy(i, *chunks[0])
            mn = jnp.min(xy0.astype(jnp.int32), axis=1, keepdims=True)        # (2, 1)
            for c0, cn in chunks[1:]:
                xyc = load_xy(i, c0, cn)
                mn = jnp.minimum(mn, jnp.min(xyc.astype(jnp.int32),
                                             axis=1, keepdims=True))

            # ---- pass 2: splat each chunk via a one-hot matmul on the MXU --------
            img = jnp.zeros((S, S), jnp.float32)
            for ci, (c0, cn) in enumerate(chunks):
                xy = xy0 if ci == 0 else load_xy(i, c0, cn)                   # (2, cn)
                xy_long = xy.astype(jnp.int32)        # trunc toward zero == torch .long()

                # feat = 2 - |long - float|_x - |long - float|_y  (BEFORE offset shift)
                feat = 2.0 - jnp.sum(jnp.abs(xy_long.astype(jnp.float32) - xy),
                                     axis=0, keepdims=True)                   # (1, cn)

                # convert2Dcoord: subtract per-(batch, dim) minimum over ALL points.
                coord = xy_long - mn                                          # (2, cn) >= 0

                # get2D out-of-range handling: offending coord -> 0, its value -> 0.
                oob = coord >= S                                              # (2, cn)
                coord = jnp.where(oob, 0, coord)
                feat = jnp.where(oob[0:1, :] | oob[1:2, :], 0.0, feat)

                row = coord[0:1, :]                                           # (1, cn)
                col = coord[1:2, :]                                           # (1, cn)

                it = iota[cn]                                                 # (S, cn)
                a = jnp.where(it == row, feat, 0.0)                           # (S, cn)
                bt = (it == col).astype(jnp.float32)                          # (S, cn)
                # A . B^T : contract the point axis (duplicate-summing scatter-add).
                img = img + lax.dot_general(a, bt, (((1,), (1,)), ((), ())),
                                            preferred_element_type=jnp.float32)
            out_ref[i] = img

    return kernel


def proj_splat(x, size2d=128, point_chunk=512):
    """ProjGen forward (the hot path of get_model) as a Pallas TPU kernel.

    x: (B, C, N) float point cloud, C >= 3 (xyz + optional extra channels).
    Returns (B, 1, size2d, size2d) float32, NCHW == splatted_2d.permute(0, 3, 1, 2).
    `features` (x[:, 3:]) is never read by ProjGen beyond its shape, so it is unused.
    """
    x = jnp.asarray(x, jnp.float32)
    B, C, N = x.shape
    scale = float(size2d // 2 - 2)

    # Chunk the points axis so the (S, TN) one-hot intermediates stay VMEM/vreg friendly.
    tn = max(1, min(point_chunk, N))
    chunks = [(c0, min(tn, N - c0)) for c0 in range(0, N, tn)]

    # Batch block: largest divisor of B (<= 8) whose double-buffered in/out blocks fit VMEM.
    def blk_bytes(bb):
        return 2 * 4 * bb * (C * N + size2d * size2d)
    candidates = [d for d in range(1, min(B, 8) + 1)
                  if B % d == 0 and blk_bytes(d) <= (16 << 20)]
    BB = max(candidates) if candidates else 1

    kernel = _make_splat_kernel(BB, size2d, scale, chunks)

    out = pl.pallas_call(
        kernel,
        out_shape=jax.ShapeDtypeStruct((B, size2d, size2d), jnp.float32),
        grid_spec=pltpu.PrefetchScalarGridSpec(
            num_scalar_prefetch=0,
            grid=(B // BB,),
            in_specs=[pl.BlockSpec((BB, C, N), lambda g: (g, 0, 0))],
            out_specs=pl.BlockSpec((BB, size2d, size2d), lambda g: (g, 0, 0)),
        ),
        compiler_params=pltpu.CompilerParams(dimension_semantics=("parallel",)),
    )(x)
    return out.reshape(B, 1, size2d, size2d)


def get_model_forward(x, size2d=128, normal_channel=True):
    """Mirrors get_model.forward(x) -> (outputs, [])."""
    splatted_2d = proj_splat(x, size2d=size2d)
    # TODO(synk): network_2d = resnet50(40) backbone definition is not provided with the
    # module, so it is not translated; the kernel returns the NCHW splatted image that
    # would be fed into it.
    outputs = splatted_2d
    return outputs, []


def _ref_splat(x, size2d):
    """Pure-JAX reference of the ProjGen forward for correctness checking."""
    scale = float(size2d // 2 - 2)
    xy = x[:, :2, :] * scale                                             # (B, 2, N)
    xy_long = xy.astype(jnp.int32)
    feat = 2.0 - jnp.sum(jnp.abs(xy_long.astype(jnp.float32) - xy), axis=1)   # (B, N)
    offset = jnp.min(xy_long, axis=2, keepdims=True)
    coord = xy_long - offset
    oob = coord >= size2d
    coord = jnp.where(oob, 0, coord)
    feat = jnp.where(oob[:, 0] | oob[:, 1], 0.0, feat)
    B, _, N = xy.shape
    img = jnp.zeros((B, size2d, size2d), jnp.float32)
    img = img.at[jnp.arange(B)[:, None], coord[:, 0], coord[:, 1]].add(feat)
    return img.reshape(B, 1, size2d, size2d)


if __name__ == "__main__":
    key = jax.random.PRNGKey(0)
    B, C, N, S = 2, 6, 256, 128                 # small batch / points, default image size
    x = jax.random.normal(key, (B, C, N), dtype=jnp.float32)

    out, extras = get_model_forward(x, size2d=S, normal_channel=True)
    out = jax.block_until_ready(out)

    assert out.shape == (B, 1, S, S) and out.dtype == jnp.float32
    ref = _ref_splat(x, S)
    np.testing.assert_allclose(np.asarray(out), np.asarray(ref), atol=1e-3, rtol=1e-3)
    print("KERNEL_OK")
</pallas_src>

<mosaic_0001>
module attributes {stable_mosaic.version = 11 : i64} {
  func.func @kernel(%arg0: i32, %arg1: memref<2x6x256xf32, #tpu.memory_space<vmem>>, %arg2: memref<2x128x128xf32, #tpu.memory_space<vmem>>) attributes {dimension_semantics = [#tpu.dimension_semantics<parallel>], iteration_bounds = array<i64: 1>, scalar_prefetch = 0 : i64, scratch_operands = 0 : i64, tpu.core_type = #tpu.core_type<tc>, window_params = [{transform_indices = @transform_0, window_bounds = array<i64: 2, 6, 256>}, {transform_indices = @transform_1, window_bounds = array<i64: 2, 128, 128>}]} {
    %0 = tpu.iota {dimensions = array<i32: 0>} : vector<128x256xi32>
    %c0 = arith.constant 0 : index
    %c0_0 = arith.constant 0 : index
    %c0_1 = arith.constant 0 : index
    %1 = vector.load %arg1[%c0, %c0_0, %c0_1] : memref<2x6x256xf32, #tpu.memory_space<vmem>>, vector<1x2x256xf32>
    %2 = vector.shape_cast %1 : vector<1x2x256xf32> to vector<2x256xf32>
    %cst = arith.constant 6.200000e+01 : f32
    %3 = vector.broadcast %cst : f32 to vector<2x256xf32>
    %4 = arith.mulf %2, %3 : vector<2x256xf32>
    %5 = arith.fptosi %4 : vector<2x256xf32> to vector<2x256xi32>
    %cst_2 = arith.constant dense<2147483647> : vector<2xi32>
    %6 = vector.multi_reduction <minsi>, %5, %cst_2 [1] : vector<2x256xi32> to vector<2xi32>
    %7 = vector.shape_cast %6 : vector<2xi32> to vector<2x1xi32>
    %cst_3 = arith.constant 0.000000e+00 : f32
    %8 = vector.broadcast %cst_3 : f32 to vector<128x128xf32>
    %9 = arith.fptosi %4 : vector<2x256xf32> to vector<2x256xi32>
    %10 = arith.sitofp %9 : vector<2x256xi32> to vector<2x256xf32>
    %11 = arith.subf %10, %4 : vector<2x256xf32>
    %12 = math.absf %11 : vector<2x256xf32>
    %cst_4 = arith.constant dense<0.000000e+00> : vector<256xf32>
    %13 = vector.multi_reduction <add>, %12, %cst_4 [0] : vector<2x256xf32> to vector<256xf32>
    %14 = vector.shape_cast %13 : vector<256xf32> to vector<1x256xf32>
    %cst_5 = arith.constant 2.000000e+00 : f32
    %15 = vector.broadcast %cst_5 : f32 to vector<1x256xf32>
    %16 = arith.subf %15, %14 : vector<1x256xf32>
    %17 = vector.broadcast %7 : vector<2x1xi32> to vector<2x256xi32>
    %18 = arith.subi %9, %17 : vector<2x256xi32>
    %c128_i32 = arith.constant 128 : i32
    %19 = vector.broadcast %c128_i32 : i32 to vector<2x256xi32>
    %20 = arith.cmpi sge, %18, %19 : vector<2x256xi32>
    %c0_i32 = arith.constant 0 : i32
    %21 = vector.broadcast %c0_i32 : i32 to vector<2x256xi32>
    %22 = arith.select %20, %21, %18 : vector<2x256xi1>, vector<2x256xi32>
    %23 = vector.extract_strided_slice %20 {offsets = [0, 0], sizes = [1, 256], strides = [1, 1]} : vector<2x256xi1> to vector<1x256xi1>
    %24 = vector.extract_strided_slice %20 {offsets = [1, 0], sizes = [1, 256], strides = [1, 1]} : vector<2x256xi1> to vector<1x256xi1>
    %25 = arith.ori %23, %24 : vector<1x256xi1>
    %cst_6 = arith.constant 0.000000e+00 : f32
    %26 = vector.broadcast %cst_6 : f32 to vector<1x256xf32>
    %27 = arith.select %25, %26, %16 : vector<1x256xi1>, vector<1x256xf32>
    %28 = vector.extract_strided_slice %22 {offsets = [0, 0], sizes = [1, 256], strides = [1, 1]} : vector<2x256xi32> to vector<1x256xi32>
    %29 = vector.extract_strided_slice %22 {offsets = [1, 0], sizes = [1, 256], strides = [1, 1]} : vector<2x256xi32> to vector<1x256xi32>
    %30 = vector.broadcast %28 : vector<1x256xi32> to vector<128x256xi32>
    %31 = arith.cmpi eq, %0, %30 : vector<128x256xi32>
    %cst_7 = arith.constant 0.000000e+00 : f32
    %32 = vector.shape_cast %27 : vector<1x256xf32> to vector<1x256xf32>
    %33 = vector.broadcast %32 : vector<1x256xf32> to vector<128x256xf32>
    %34 = vector.broadcast %cst_7 : f32 to vector<128x256xf32>
    %35 = arith.select %31, %33, %34 : vector<128x256xi1>, vector<128x256xf32>
    %36 = vector.broadcast %29 : vector<1x256xi32> to vector<128x256xi32>
    %37 = arith.cmpi eq, %0, %36 : vector<128x256xi32>
    %38 = arith.extui %37 : vector<128x256xi1> to vector<128x256xi32>
    %39 = arith.sitofp %38 : vector<128x256xi32> to vector<128x256xf32>
    %cst_8 = arith.constant dense<0.000000e+00> : vector<128x128xf32>
    %40 = tpu.matmul %35, %39, %cst_8 {dimension_numbers = #tpu.dot_dimension_numbers<[1], [1], [0], [0], [0, 0, 1, 0], [], []>} : vector<128x256xf32>, vector<128x256xf32>, vector<128x128xf32> -> vector<128x128xf32>
    %41 = arith.addf %8, %40 : vector<128x128xf32>
    %c0_9 = arith.constant 0 : index
    %c0_10 = arith.constant 0 : index
    %c0_11 = arith.constant 0 : index
    %42 = vector.load %arg2[%c0_9, %c0_10, %c0_11] : memref<2x128x128xf32, #tpu.memory_space<vmem>>, vector<1x128x128xf32>
    %43 = vector.shape_cast %42 : vector<1x128x128xf32> to vector<128x128xf32>
    %44 = vector.shape_cast %41 : vector<128x128xf32> to vector<1x128x128xf32>
    tpu.vector_store %arg2[%c0_9, %c0_10, %c0_11], %44 {strides = array<i32>} : memref<2x128x128xf32, #tpu.memory_space<vmem>>, vector<1x128x128xf32>,
    %c1 = arith.constant 1 : index
    %c0_12 = arith.constant 0 : index
    %c0_13 = arith.constant 0 : index
    %45 = vector.load %arg1[%c1, %c0_12, %c0_13] : memref<2x6x256xf32, #tpu.memory_space<vmem>>, vector<1x2x256xf32>
    %46 = vector.shape_cast %45 : vector<1x2x256xf32> to vector<2x256xf32>
    %cst_14 = arith.constant 6.200000e+01 : f32
    %47 = vector.broadcast %cst_14 : f32 to vector<2x256xf32>
    %48 = arith.mulf %46, %47 : vector<2x256xf32>
    %49 = arith.fptosi %48 : vector<2x256xf32> to vector<2x256xi32>
    %cst_15 = arith.constant dense<2147483647> : vector<2xi32>
    %50 = vector.multi_reduction <minsi>, %49, %cst_15 [1] : vector<2x256xi32> to vector<2xi32>
    %51 = vector.shape_cast %50 : vector<2xi32> to vector<2x1xi32>
    %cst_16 = arith.constant 0.000000e+00 : f32
    %52 = vector.broadcast %cst_16 : f32 to vector<128x128xf32>
    %53 = arith.fptosi %48 : vector<2x256xf32> to vector<2x256xi32>
    %54 = arith.sitofp %53 : vector<2x256xi32> to vector<2x256xf32>
    %55 = arith.subf %54, %48 : vector<2x256xf32>
    %56 = math.absf %55 : vector<2x256xf32>
    %cst_17 = arith.constant dense<0.000000e+00> : vector<256xf32>
    %57 = vector.multi_reduction <add>, %56, %cst_17 [0] : vector<2x256xf32> to vector<256xf32>
    %58 = vector.shape_cast %57 : vector<256xf32> to vector<1x256xf32>
    %cst_18 = arith.constant 2.000000e+00 : f32
    %59 = vector.broadcast %cst_18 : f32 to vector<1x256xf32>
    %60 = arith.subf %59, %58 : vector<1x256xf32>
    %61 = vector.broadcast %51 : vector<2x1xi32> to vector<2x256xi32>
    %62 = arith.subi %53, %61 : vector<2x256xi32>
    %c128_i32_19 = arith.constant 128 : i32
    %63 = vector.broadcast %c128_i32_19 : i32 to vector<2x256xi32>
    %64 = arith.cmpi sge, %62, %63 : vector<2x256xi32>
    %c0_i32_20 = arith.constant 0 : i32
    %65 = vector.broadcast %c0_i32_20 : i32 to vector<2x256xi32>
    %66 = arith.select %64, %65, %62 : vector<2x256xi1>, vector<2x256xi32>
    %67 = vector.extract_strided_slice %64 {offsets = [0, 0], sizes = [1, 256], strides = [1, 1]} : vector<2x256xi1> to vector<1x256xi1>
    %68 = vector.extract_strided_slice %64 {offsets = [1, 0], sizes = [1, 256], strides = [1, 1]} : vector<2x256xi1> to vector<1x256xi1>
    %69 = arith.ori %67, %68 : vector<1x256xi1>
    %cst_21 = arith.constant 0.000000e+00 : f32
    %70 = vector.broadcast %cst_21 : f32 to vector<1x256xf32>
    %71 = arith.select %69, %70, %60 : vector<1x256xi1>, vector<1x256xf32>
    %72 = vector.extract_strided_slice %66 {offsets = [0, 0], sizes = [1, 256], strides = [1, 1]} : vector<2x256xi32> to vector<1x256xi32>
    %73 = vector.extract_strided_slice %66 {offsets = [1, 0], sizes = [1, 256], strides = [1, 1]} : vector<2x256xi32> to vector<1x256xi32>
    %74 = vector.broadcast %72 : vector<1x256xi32> to vector<128x256xi32>
    %75 = arith.cmpi eq, %0, %74 : vector<128x256xi32>
    %cst_22 = arith.constant 0.000000e+00 : f32
    %76 = vector.shape_cast %71 : vector<1x256xf32> to vector<1x256xf32>
    %77 = vector.broadcast %76 : vector<1x256xf32> to vector<128x256xf32>
    %78 = vector.broadcast %cst_22 : f32 to vector<128x256xf32>
    %79 = arith.select %75, %77, %78 : vector<128x256xi1>, vector<128x256xf32>
    %80 = vector.broadcast %73 : vector<1x256xi32> to vector<128x256xi32>
    %81 = arith.cmpi eq, %0, %80 : vector<128x256xi32>
    %82 = arith.extui %81 : vector<128x256xi1> to vector<128x256xi32>
    %83 = arith.sitofp %82 : vector<128x256xi32> to vector<128x256xf32>
    %cst_23 = arith.constant dense<0.000000e+00> : vector<128x128xf32>
    %84 = tpu.matmul %79, %83, %cst_23 {dimension_numbers = #tpu.dot_dimension_numbers<[1], [1], [0], [0], [0, 0, 1, 0], [], []>} : vector<128x256xf32>, vector<128x256xf32>, vector<128x128xf32> -> vector<128x128xf32>
    %85 = arith.addf %52, %84 : vector<128x128xf32>
    %c1_24 = arith.constant 1 : index
    %c0_25 = arith.constant 0 : index
    %c0_26 = arith.constant 0 : index
    %86 = vector.load %arg2[%c1_24, %c0_25, %c0_26] : memref<2x128x128xf32, #tpu.memory_space<vmem>>, vector<1x128x128xf32>
    %87 = vector.shape_cast %86 : vector<1x128x128xf32> to vector<128x128xf32>
    %88 = vector.shape_cast %85 : vector<128x128xf32> to vector<1x128x128xf32>
    tpu.vector_store %arg2[%c1_24, %c0_25, %c0_26], %88 {strides = array<i32>} : memref<2x128x128xf32, #tpu.memory_space<vmem>>, vector<1x128x128xf32>,
    return
  }
  func.func @transform_0(%arg0: i32) -> (i32, i32, i32) {
    %c0_i32 = arith.constant 0 : i32
    %c0_i32_0 = arith.constant 0 : i32
    %c0_i32_1 = arith.constant 0 : i32
    return %arg0, %c0_i32, %c0_i32_0 : i32, i32, i32
  }
  func.func @transform_1(%arg0: i32) -> (i32, i32, i32) {
    %c0_i32 = arith.constant 0 : i32
    %c0_i32_0 = arith.constant 0 : i32
    %c0_i32_1 = arith.constant 0 : i32
    return %arg0, %c0_i32, %c0_i32_0 : i32, i32, i32
  }
}

</mosaic_0001>

<bundles_post_ra>
// kernel: tpu_custom_call.1
= control target key start
LH: loop header
LB: loop body
LE: loop exit
PB: predicated region body
PF: predicated region fallthrough
CT: control target
= control target key end

     0   :  { %vm32_vm0 = vcmask 1041408   ;;  %s1756_s0 = inlined_call_operand.vmem [shape: f32[2,6,256], index: 0, kind: input, shape index: {}]   ;;  %s1757_s1 = inlined_call_operand.hbm [shape: f32[2,128,128], index: 1, kind: output, shape index: {}]  }
   0x1   :  { %v891_v0 = vld [vmem:[%s1756_s0 + $0x10] sm:$0x3]  ;;  %v892_v1 = vld [vmem:[%s1756_s0 + $0x18] sm:$0x3]  ;;  %v26_v4 = vld [vmem:[%s1756_s0] sm:$0x3] }
   0x2   :  { %v404_v2 = vmul.f32 62.0, %v891_v0  ;;  %v405_v3 = vmul.f32 62.0, %v892_v1  ;;  %v27_v5 = vld [vmem:[%s1756_s0 + $0x8] sm:$0x3]  ;;  %v28_v6 = vmul.f32 62.0, %v26_v4 }
   0x3   :  { %v29_v7 = vmul.f32 62.0, %v27_v5 }
   0x4   :  { %6 = vsyncpa [#allocation3], 0  ;;  %vm999_vm1 = vcmp.lt.s32.totalorder %v404_v2, 0  ;;  %v1000_v8 = vceil.f32 %v404_v2  ;;  %v1001_v9 = vfloor.f32 %v404_v2  ;;  %vm1004_vm2 = vcmp.lt.s32.totalorder %v405_v3, 0  ;;  %s1042_s0 = smov [#allocation2]   ;;  %s783_s17 = sshll.u32 %s1757_s1, 4  ;;  %s784_s17 = int_to_ptr.hbm [resolvable:$true] %s783_s17 }
   0x5   :  { %v1005_v10 = vceil.f32 %v405_v3  ;;  %v1006_v11 = vfloor.f32 %v405_v3  ;;  %vm989_vm3 = vcmp.lt.s32.totalorder %v28_v6, 0  ;;  %v990_v12 = vceil.f32 %v28_v6  ;;  %s781_s14 = sshll.u32 %s1042_s0, 4  ;;  %s1043_s18 = smov 128   ;;  %s782_s14 = int_to_ptr.vmem [resolvable:$true] %s781_s14 }
   0x6   :  { %v1002_v13 = vsel %vm999_vm1, %v1000_v8, %v1001_v9  ;;  %v991_v14 = vfloor.f32 %v28_v6  ;;  %vm994_vm4 = vcmp.lt.s32.totalorder %v29_v7, 0  ;;  %v995_v15 = vceil.f32 %v29_v7  ;;  %s1044_s19 = smov 8  }
   0x7   :  { %v1067_v16 = vcvt.f32.s32 %v1002_v13  ;;  %v1007_v17 = vsel %vm1004_vm2, %v1005_v10, %v1006_v11  ;;  %v996_v18 = vfloor.f32 %v29_v7 }
   0x8   :  { %v1069_v19 = vcvt.f32.s32 %v1007_v17  ;;  %v992_v20 = vsel %vm989_vm3, %v990_v12, %v991_v14 }
   0x9   :  { %v408_v21 = vsel %vm32_vm0, %v1067_v16, 2147483647  ;;  %v1073_v22 = vcvt.f32.s32 %v992_v20  ;;  %v997_v23 = vsel %vm994_vm4, %v995_v15, %v996_v18  ;;  %v426_v42 = vcvt.s32.f32 %v1067_v16 }
   0xa   :  { %v409_v24 = vsel %vm32_vm0, %v1069_v19, 2147483647  ;;  %v1077_v25 = vcvt.f32.s32 %v997_v23  ;;  %v427_v43 = vcvt.s32.f32 %v1069_v19 }
   0xb   :  { %vm410_vm5 = vcmp.lt.s32.totalorder %v408_v21, %v409_v24  ;;  %v33_v26 = vsel %vm32_vm0, %v1073_v22, 2147483647  ;;  %v428_v44 = vsub.f32 %v426_v42, %v404_v2  ;;  %v51_v48 = vcvt.s32.f32 %v1073_v22 }
   0xc   :  { %v411_v27 = vsel %vm410_vm5, %v408_v21, %v409_v24  ;;  %v34_v28 = vsel %vm32_vm0, %v1077_v25, 2147483647  ;;  %v429_v45 = vsub.f32 %v427_v43, %v405_v3  ;;  %v52_v50 = vcvt.s32.f32 %v1077_v25 }
   0xd   :  { %v413_v29 = vshra.s32 %v411_v27, 16  ;;  %vm35_vm6 = vcmp.lt.s32.totalorder %v33_v26, %v34_v28  ;;  %v412_v34 = vand.u32 65535, %v411_v27  ;;  %v430_v46 = vand.u32 2147483647, %v428_v44 }
   0xe   :  { %v36_v30 = vsel %vm35_vm6, %v33_v26, %v34_v28  ;;  %v431_v47 = vand.u32 2147483647, %v429_v45  ;;  %v53_v52 = vsub.f32 %v51_v48, %v28_v6  ;;  %v54_v55 = vsub.f32 %v52_v50, %v29_v7 }
   0xf   :  { %v415_v31 = vcvt.s32.f32 %v413_v29  ;;  %v38_v32 = vshra.s32 %v36_v30, 16  ;;  %v414_v35 = vcvt.s32.f32 %v412_v34  ;;  %v37_v38 = vand.u32 65535, %v36_v30 }
  0x10   :  { %v432_v49 = vsel %vm32_vm0, %v430_v46, 0.0  ;;  %v439_v51 = vsel %vm32_vm0, %v431_v47, 0.0  ;;  %v55_v56 = vand.u32 2147483647, %v53_v52  ;;  %v56_v59 = vand.u32 2147483647, %v54_v55 }
  0x11   :  { %416 = vmin.xlane.f32.xlu0 %v415_v31  ;;  %v40_v33 = vcvt.s32.f32 %v38_v32  ;;  %v39_v39 = vcvt.s32.f32 %v37_v38  ;;  %v433_v53 = vrot.slane %v432_v49, 4  ;;  %v440_v54 = vrot.slane %v439_v51, 4 }
  0x12   :  { %v57_v60 = vsel %vm32_vm0, %v55_v56, 0.0  ;;  %v64_v0 = vsel %vm32_vm0, %v56_v59, 0.0  ;;  %v9_v7 = vlaneseq  ;;  %v1041_v48 = vmov 1.0  }
  0x13   :  { %v434_v57 = vadd.f32 %v433_v53, %v432_v49  ;;  %v441_v58 = vadd.f32 %v440_v54, %v439_v51  ;;  %v58_v63 = vrot.slane %v57_v60, 4  ;;  %v65_v3 = vrot.slane %v64_v0, 4 }
  0x14   :  { %v1091_v20 = vshrl.u32 %v9_v7, 7 }
  0x15   :  { %v435_v61 = vrot.slane %v434_v57, 2  ;;  %v442_v62 = vrot.slane %v441_v58, 2  ;;  %v59_v4 = vadd.f32 %v58_v63, %v57_v60  ;;  %v66_v9 = vadd.f32 %v65_v3, %v64_v0 }
  0x16   :  { %v1120_v46 = vadd.s32 112, %v1091_v20  ;;  %v1132_v54 = vadd.s32 104, %v1091_v20  ;;  %v1149_v63 = vadd.s32 96, %v1091_v20  ;;  %v1189_v3 = vadd.s32 80, %v1091_v20 }
  0x17   :  { %v436_v1 = vadd.f32 %v435_v61, %v434_v57  ;;  %v443_v2 = vadd.f32 %v442_v62, %v441_v58  ;;  %v60_v10 = vrot.slane %v59_v4, 2  ;;  %v67_v18 = vrot.slane %v66_v9, 2 }
  0x18   :  { %v1225_v7 = vadd.s32 48, %v1091_v20 }
  0x19   :  { %41 = vmin.xlane.f32.xlu0 %v40_v33  ;;  %v437_v6 = vrot.slane %v436_v1, 1  ;;  %v444_v8 = vrot.slane %v443_v2, 1  ;;  %v61_v23 = vadd.f32 %v60_v10, %v59_v4  ;;  %v68_v30 = vadd.f32 %v67_v18, %v66_v9 }
  0x1a   :  { %v1200_v4 = vadd.s32 72, %v1091_v20  ;;  %v1222_v9 = vadd.s32 56, %v1091_v20  ;;  %v1246_v10 = vadd.s32 40, %v1091_v20 }
  0x1b   :  { %v438_v13 = vadd.f32 %v437_v6, %v436_v1  ;;  %v445_v17 = vadd.f32 %v444_v8, %v443_v2  ;;  %v62_v32 = vrot.slane %v61_v23, 1  ;;  %v69_v43 = vrot.slane %v68_v30, 1 }
  0x1c   :  { %v1174_v2 = vadd.s32 88, %v1091_v20  ;;  %v1219_v8 = vadd.s32 64, %v1091_v20 }
  0x1d   :  { %v446_v24 = vsub.f32 2.0, %v438_v13  ;;  %v447_v29 = vsub.f32 2.0, %v445_v17  ;;  %v63_v50 = vadd.f32 %v62_v32, %v61_v23  ;;  %v70_v53 = vadd.f32 %v69_v43, %v68_v30 }
  0x1e   :  { %v1448_v13 = vadd.s32 16, %v1091_v20 }
  0x1f   :  { %v71_v57 = vsub.f32 2.0, %v63_v50  ;;  %v72_v60 = vsub.f32 2.0, %v70_v53 }
  0x84   :  { %v417_v36 = vpop.xlane.xlu0 %416 }
  0x85   :  { %vm418_vm7 = vcmp.eq.f32.partialorder %v415_v31, %v417_v36  ;;  %v423_v5 = vcvt.f32.s32 %v417_v36  ;;  %v1096_v31 = vadd.s32 120, %v1091_v20 }
  0x86   :  { %v419_v37 = vsel %vm418_vm7, %v414_v35, inf  ;;  %v1040_v35 = vmov 0  }
  0x87   :  { %420 = vmin.xlane.f32.xlu1 %v419_v37  ;;  %v424_v12 = vshll.u32 %v423_v5, 16 }
  0x8c   :  { %v42_v40 = vpop.xlane.xlu0 %41 }
  0x8d   :  { %vm43_vm8 = vcmp.eq.f32.partialorder %v40_v33, %v42_v40  ;;  %v48_v15 = vcvt.f32.s32 %v42_v40 }
  0x8e   :  { %v44_v41 = vsel %vm43_vm8, %v39_v39, inf }
  0x8f   :  { %45 = vmin.xlane.f32.xlu1 %v44_v41  ;;  %v49_v28 = vshll.u32 %v48_v15, 16 }
  0xfa   :  { %v421_v11 = vpop.xlane.xlu1 %420 }
  0xfb   :  { %v422_v14 = vcvt.f32.s32 %v421_v11  ;;  %v1385_v11 = vadd.s32 32, %v1091_v20 }
  0xfd   :  { %v425_v21 = vadd.s32 %v424_v12, %v422_v14  ;;  %v1433_v12 = vadd.s32 24, %v1091_v20  ;;  %v11_v14 = vadd.s32 8, %v1091_v20 }
  0xff   :  { %v448_v26 = vsub.s32 %v1067_v16, %v425_v21  ;;  %v449_v27 = vsub.s32 %v1069_v19, %v425_v21 }
 0x101   :  { %vm450_vm9 = vcmp.ge.s32.totalorder %v448_v26, 128  ;;  %vm451_vm10 = vcmp.ge.s32.totalorder %v449_v27, 128 }
 0x102   :  { %v452_v33 = vsel %vm450_vm9, 0, %v448_v26  ;;  %v453_v34 = vsel %vm451_vm10, 0, %v449_v27  ;;  %v454_v36 = vsel %vm450_vm9, 1, %v1040_v35  ;;  %v455_v16 = vsel %vm451_vm10, 1, %v1040_v35  ;;  %v46_v37 = vpop.xlane.xlu1 %45 }
 0x103   :  { %v456_v19 = vrot.slane %v454_v36, 1  ;;  %v457_v38 = vrot.slane %v455_v16, 1  ;;  %v1102_v39 = vperm.slane %v452_v33, 0  ;;  %v1104_v40 = vperm.slane %v453_v34, 0 }
 0x104   :  { %v1106_v41 = vperm.slane %v452_v33, 1  ;;  %v1108_v42 = vperm.slane %v453_v34, 1  ;;  %v47_v44 = vcvt.f32.s32 %v46_v37 }
 0x105   :  { %vm458_vm11 = vcmp.ne.s32.totalorder %v456_v19, 0  ;;  %vm459_vm12 = vcmp.ne.s32.totalorder %v457_v38, 0  ;;  %vm466_vm13 = vcmp.eq.s32.totalorder %v1091_v20, %v1102_v39 }
 0x106   :  { %vm460_vm15 = vmor %vm450_vm9, %vm458_vm11  ;;  %v50_v45 = vadd.s32 %v49_v28, %v47_v44  ;;  %vm564_vm0 = vcmp.eq.s32.totalorder %v1096_v31, %v1106_v41  ;;  %vm565_vm1 = vcmp.eq.s32.totalorder %v1096_v31, %v1108_v42  ;;  %vm562_vm5 = vcmp.eq.s32.totalorder %v1120_v46, %v1106_v41 }
 0x107   :  { %vm461_vm2 = vmor %vm451_vm10, %vm459_vm12  ;;  %v1123_v47 = vsel %vm460_vm15, 0.0, %v446_v24  ;;  %925 = vmatpush.xpose.msk.msra.mxu2 %vm564_vm0, %v1041_v48  ;;  %957 = vmatpush.xpose.msk.msra.mxu3 %vm565_vm1, %v1041_v48  ;;  %vm563_vm6 = vcmp.eq.s32.totalorder %v1120_v46, %v1108_v42  ;;  %vm560_vm9 = vcmp.eq.s32.totalorder %v1132_v54, %v1106_v41  ;;  %vm561_vm10 = vcmp.eq.s32.totalorder %v1132_v54, %v1108_v42 }
 0x108   :  { %v1127_v49 = vsel %vm461_vm2, 0.0, %v447_v29  ;;  %v73_v51 = vsub.s32 %v1073_v22, %v50_v45  ;;  %v74_v52 = vsub.s32 %v1077_v25, %v50_v45  ;;  %vm558_vm1 = vcmp.eq.s32.totalorder %v1149_v63, %v1106_v41 }
 0x109   :  { %vm559_vm2 = vcmp.eq.s32.totalorder %v1149_v63, %v1108_v42  ;;  %v1492_v15 = vperm.slane %v1123_v47, 0  ;;  %v1495_v17 = vperm.slane %v1127_v49, 0 }
 0x10a   :  { %vm75_vm3 = vcmp.ge.s32.totalorder %v73_v51, 128  ;;  %vm76_vm4 = vcmp.ge.s32.totalorder %v74_v52, 128 }
 0x10b   :  { %v77_v55 = vsel %vm75_vm3, 0, %v73_v51  ;;  %v78_v56 = vsel %vm76_vm4, 0, %v74_v52  ;;  %v79_v22 = vsel %vm75_vm3, 1, %v1040_v35  ;;  %v80_v25 = vsel %vm76_vm4, 1, %v1040_v35  ;;  %926 = vmatpush.xpose.msk.msra.mxu2 %vm562_vm5, %v1041_v48  ;;  %958 = vmatpush.xpose.msk.msra.mxu3 %vm563_vm6, %v1041_v48 }
 0x10c   :  { %v81_v58 = vrot.slane %v79_v22, 1  ;;  %v82_v59 = vrot.slane %v80_v25, 1  ;;  %v1144_v61 = vperm.slane %v77_v55, 1  ;;  %v1146_v62 = vperm.slane %v78_v56, 1 }
 0x10d   :  { %vm556_vm5 = vcmp.eq.s32.totalorder %v1174_v2, %v1106_v41  ;;  %vm557_vm6 = vcmp.eq.s32.totalorder %v1174_v2, %v1108_v42  ;;  %v1202_v5 = vperm.slane %v77_v55, 0  ;;  %v1204_v6 = vperm.slane %v78_v56, 0 }
 0x10e   :  { %vm83_vm7 = vcmp.ne.s32.totalorder %v81_v58, 0  ;;  %vm84_vm8 = vcmp.ne.s32.totalorder %v82_v59, 0  ;;  %vm189_vm12 = vcmp.eq.s32.totalorder %v1096_v31, %v1144_v61  ;;  %vm190_vm15 = vcmp.eq.s32.totalorder %v1096_v31, %v1146_v62 }
 0x10f   :  { %vm85_vm11 = vmor %vm75_vm3, %vm83_vm7  ;;  %927 = vmatpush.xpose.msk.msra.mxu2 %vm560_vm9, %v1041_v48  ;;  %959 = vmatpush.xpose.msk.msra.mxu3 %vm561_vm10, %v1041_v48  ;;  %vm187_vm3 = vcmp.eq.s32.totalorder %v1120_v46, %v1144_v61  ;;  %vm185_vm7 = vcmp.eq.s32.totalorder %v1132_v54, %v1144_v61  ;;  %vm554_vm9 = vcmp.eq.s32.totalorder %v1189_v3, %v1106_v41 }
 0x110   :  { %vm86_vm0 = vmor %vm76_vm4, %vm84_vm8  ;;  %v1163_v0 = vsel %vm85_vm11, 0.0, %v71_v57  ;;  %827 = vmatpush.xpose.msk.msra.mxu0 %vm189_vm12, %v1041_v48  ;;  %859 = vmatpush.xpose.msk.msra.mxu1 %vm190_vm15, %v1041_v48  ;;  %vm188_vm4 = vcmp.eq.s32.totalorder %v1120_v46, %v1146_v62  ;;  %vm186_vm8 = vcmp.eq.s32.totalorder %v1132_v54, %v1146_v62  ;;  %vm555_vm10 = vcmp.eq.s32.totalorder %v1189_v3, %v1108_v42 }
 0x111   :  { %v1167_v1 = vsel %vm86_vm0, 0.0, %v72_v60  ;;  %vm183_vm11 = vcmp.eq.s32.totalorder %v1149_v63, %v1144_v61  ;;  %vm184_vm12 = vcmp.eq.s32.totalorder %v1149_v63, %v1146_v62  ;;  %vm173_vm15 = vcmp.eq.s32.totalorder %v1222_v9, %v1144_v61 }
 0x112   :  { %vm495_vm0 = vcmp.eq.s32.totalorder %v1120_v46, %v1104_v40  ;;  %vm174_vm14 = vcmp.eq.s32.totalorder %v1222_v9, %v1146_v62  ;;  %v1520_v18 = vperm.slane %v1163_v0, 0  ;;  %v1523_v21 = vperm.slane %v1167_v1, 0 }
 0x113   :  { %928 = vmatpush.xpose.msk.msra.mxu2 %vm558_vm1, %v1041_v48  ;;  %960 = vmatpush.xpose.msk.msra.mxu3 %vm559_vm2, %v1041_v48  ;;  %vm552_vm1 = vcmp.eq.s32.totalorder %v1200_v4, %v1106_v41  ;;  %vm553_vm2 = vcmp.eq.s32.totalorder %v1200_v4, %v1108_v42 }
 0x114   :  { %828 = vmatpush.xpose.msk.msra.mxu0 %vm187_vm3, %v1041_v48  ;;  %860 = vmatpush.xpose.msk.msra.mxu1 %vm188_vm4, %v1041_v48  ;;  %vm175_vm4 = vcmp.eq.s32.totalorder %v1219_v8, %v1144_v61  ;;  %vm176_vm3 = vcmp.eq.s32.totalorder %v1219_v8, %v1146_v62 }
 0x117   :  { %929 = vmatpush.xpose.msk.msra.mxu2 %vm556_vm5, %v1041_v48  ;;  %961 = vmatpush.xpose.msk.msra.mxu3 %vm557_vm6, %v1041_v48  ;;  %vm181_vm5 = vcmp.eq.s32.totalorder %v1174_v2, %v1144_v61  ;;  %vm182_vm6 = vcmp.eq.s32.totalorder %v1174_v2, %v1146_v62 }
 0x118   :  { %829 = vmatpush.xpose.msk.msra.mxu0 %vm185_vm7, %v1041_v48  ;;  %861 = vmatpush.xpose.msk.msra.mxu1 %vm186_vm8, %v1041_v48  ;;  %vm179_vm7 = vcmp.eq.s32.totalorder %v1189_v3, %v1144_v61  ;;  %vm550_vm8 = vcmp.eq.s32.totalorder %v1219_v8, %v1106_v41 }
 0x11b   :  { %930 = vmatpush.xpose.msk.msra.mxu2 %vm554_vm9, %v1041_v48  ;;  %962 = vmatpush.xpose.msk.msra.mxu3 %vm555_vm10, %v1041_v48  ;;  %vm180_vm9 = vcmp.eq.s32.totalorder %v1189_v3, %v1146_v62  ;;  %vm551_vm10 = vcmp.eq.s32.totalorder %v1219_v8, %v1108_v42 }
 0x11c   :  { %830 = vmatpush.xpose.msk.msra.mxu0 %vm183_vm11, %v1041_v48  ;;  %862 = vmatpush.xpose.msk.msra.mxu1 %vm184_vm12, %v1041_v48  ;;  %vm177_vm11 = vcmp.eq.s32.totalorder %v1200_v4, %v1144_v61  ;;  %vm178_vm12 = vcmp.eq.s32.totalorder %v1200_v4, %v1146_v62 }
 0x11f   :  { %931 = vmatpush.xpose.msk.msra.mxu2 %vm552_vm1, %v1041_v48  ;;  %963 = vmatpush.xpose.msk.msra.mxu3 %vm553_vm2, %v1041_v48  ;;  %vm548_vm1 = vcmp.eq.s32.totalorder %v1222_v9, %v1106_v41  ;;  %vm549_vm2 = vcmp.eq.s32.totalorder %v1222_v9, %v1108_v42 }
 0x120   :  { %831 = vmatpush.xpose.msk.msra.mxu0 %vm181_vm5, %v1041_v48  ;;  %863 = vmatpush.xpose.msk.msra.mxu1 %vm182_vm6, %v1041_v48  ;;  %vm546_vm5 = vcmp.eq.s32.totalorder %v1225_v7, %v1106_v41  ;;  %vm547_vm6 = vcmp.eq.s32.totalorder %v1225_v7, %v1108_v42 }
 0x123   :  { %932 = vmatpush.xpose.msk.msra.mxu2 %vm550_vm8, %v1041_v48  ;;  %964 = vmatpush.xpose.msk.msra.mxu3 %vm551_vm10, %v1041_v48  ;;  %vm544_vm8 = vcmp.eq.s32.totalorder %v1246_v10, %v1106_v41  ;;  %vm545_vm10 = vcmp.eq.s32.totalorder %v1246_v10, %v1108_v42 }
 0x124   :  { %832 = vmatpush.xpose.msk.msra.mxu0 %vm179_vm7, %v1041_v48  ;;  %864 = vmatpush.xpose.msk.msra.mxu1 %vm180_vm9, %v1041_v48  ;;  %vm481_vm9 = vcmp.eq.s32.totalorder %v1222_v9, %v1104_v40  ;;  %vm166_vm7 = vcmp.eq.s32.totalorder %v1433_v12, %v1146_v62 }
 0x127   :  { %933 = vmatpush.xpose.msk.msra.mxu2 %vm548_vm1, %v1041_v48  ;;  %965 = vmatpush.xpose.msk.msra.mxu3 %vm549_vm2, %v1041_v48  ;;  %vm488_vm1 = vcmp.eq.s32.totalorder %v1174_v2, %v1102_v39  ;;  %vm489_vm2 = vcmp.eq.s32.totalorder %v1174_v2, %v1104_v40 }
 0x128   :  { %833 = vmatpush.xpose.msk.msra.mxu0 %vm177_vm11, %v1041_v48  ;;  %865 = vmatpush.xpose.msk.msra.mxu1 %vm178_vm12, %v1041_v48  ;;  %vm487_vm11 = vcmp.eq.s32.totalorder %v1189_v3, %v1104_v40  ;;  %vm490_vm12 = vcmp.eq.s32.totalorder %v1149_v63, %v1102_v39 }
 0x12b   :  { %934 = vmatpush.xpose.msk.msra.mxu2 %vm546_vm5, %v1041_v48  ;;  %966 = vmatpush.xpose.msk.msra.mxu3 %vm547_vm6, %v1041_v48  ;;  %vm172_vm5 = vcmp.eq.s32.totalorder %v1225_v7, %v1146_v62  ;;  %vm169_vm6 = vcmp.eq.s32.totalorder %v1246_v10, %v1144_v61 }
 0x12c   :  { %834 = vmatpush.xpose.msk.msra.mxu0 %vm175_vm4, %v1041_v48  ;;  %866 = vmatpush.xpose.msk.msra.mxu1 %vm176_vm3, %v1041_v48  ;;  %vm494_vm3 = vcmp.eq.s32.totalorder %v1120_v46, %v1102_v39  ;;  %vm543_vm4 = vcmp.eq.s32.totalorder %v1385_v11, %v1108_v42 }
 0x12f   :  { %935 = vmatpush.xpose.msk.msra.mxu2 %vm544_vm8, %v1041_v48  ;;  %967 = vmatpush.xpose.msk.msra.mxu3 %vm545_vm10, %v1041_v48  ;;  %vm542_vm8 = vcmp.eq.s32.totalorder %v1385_v11, %v1106_v41  ;;  %vm171_vm10 = vcmp.eq.s32.totalorder %v1225_v7, %v1144_v61 }
 0x130   :  { %835 = vmatpush.xpose.msk.msra.mxu0 %vm173_vm15, %v1041_v48  ;;  %867 = vmatpush.xpose.msk.msra.mxu1 %vm174_vm14, %v1041_v48  ;;  %vm540_vm14 = vcmp.eq.s32.totalorder %v1433_v12, %v1106_v41  ;;  %vm541_vm15 = vcmp.eq.s32.totalorder %v1433_v12, %v1108_v42 }
 0x133   :  { %936 = vmatpush.xpose.msk.msra.mxu2 %vm542_vm8, %v1041_v48  ;;  %968 = vmatpush.xpose.msk.msra.mxu3 %vm543_vm4, %v1041_v48  ;;  %vm170_vm8 = vcmp.eq.s32.totalorder %v1246_v10, %v1146_v62  ;;  %vm539_vm4 = vcmp.eq.s32.totalorder %v1448_v13, %v1108_v42 }
 0x134   :  { %836 = vmatpush.xpose.msk.msra.mxu0 %vm171_vm10, %v1041_v48  ;;  %868 = vmatpush.xpose.msk.msra.mxu1 %vm172_vm5, %v1041_v48  ;;  %vm538_vm5 = vcmp.eq.s32.totalorder %v1448_v13, %v1106_v41  ;;  %vm167_vm10 = vcmp.eq.s32.totalorder %v1385_v11, %v1144_v61 }
 0x137   :  { %937 = vmatpush.xpose.msk.msra.mxu2 %vm540_vm14, %v1041_v48  ;;  %969 = vmatpush.xpose.msk.msra.mxu3 %vm541_vm15, %v1041_v48  ;;  %vm168_vm14 = vcmp.eq.s32.totalorder %v1385_v11, %v1146_v62  ;;  %vm537_vm15 = vcmp.eq.s32.totalorder %v11_v14, %v1108_v42 }
 0x138   :  { %837 = vmatpush.xpose.msk.msra.mxu0 %vm169_vm6, %v1041_v48  ;;  %869 = vmatpush.xpose.msk.msra.mxu1 %vm170_vm8, %v1041_v48  ;;  %vm536_vm6 = vcmp.eq.s32.totalorder %v11_v14, %v1106_v41  ;;  %vm165_vm8 = vcmp.eq.s32.totalorder %v1433_v12, %v1144_v61 }
 0x13b   :  { %938 = vmatpush.xpose.msk.msra.mxu2 %vm538_vm5, %v1041_v48  ;;  %970 = vmatpush.xpose.msk.msra.mxu3 %vm539_vm4, %v1041_v48  ;;  %vm534_vm5 = vcmp.eq.s32.totalorder %v1091_v20, %v1106_v41  ;;  %vm535_vm4 = vcmp.eq.s32.totalorder %v1091_v20, %v1108_v42 }
 0x13c   :  { %838 = vmatpush.xpose.msk.msra.mxu0 %vm167_vm10, %v1041_v48  ;;  %870 = vmatpush.xpose.msk.msra.mxu1 %vm168_vm14, %v1041_v48  ;;  %vm163_vm10 = vcmp.eq.s32.totalorder %v1448_v13, %v1144_v61  ;;  %vm164_vm14 = vcmp.eq.s32.totalorder %v1448_v13, %v1146_v62 }
 0x13f   :  { %939 = vmatpush.xpose.msk.msra.mxu2 %vm536_vm6, %v1041_v48  ;;  %971 = vmatpush.xpose.msk.msra.mxu3 %vm537_vm15, %v1041_v48  ;;  %vm161_vm6 = vcmp.eq.s32.totalorder %v11_v14, %v1144_v61  ;;  %vm162_vm15 = vcmp.eq.s32.totalorder %v11_v14, %v1146_v62 }
 0x140   :  { %839 = vmatpush.xpose.msk.msra.mxu0 %vm165_vm8, %v1041_v48  ;;  %871 = vmatpush.xpose.msk.msra.mxu1 %vm166_vm7, %v1041_v48  ;;  %vm1758_vm7 = vcmp.eq.s32.totalorder %v1091_v20, %v1104_v40  ;;  %vm1759_vm8 = vcmp.eq.s32.totalorder %v1091_v20, %v1144_v61 }
 0x143   :  { %940 = vmatpush.xpose.msk.msra.mxu2 %vm534_vm5, %v1041_v48  ;;  %972 = vmatpush.xpose.msk.msra.mxu3 %vm535_vm4, %v1041_v48  ;;  %vm468_vm5 = vcmp.eq.s32.totalorder %v11_v14, %v1102_v39  ;;  %vm469_vm4 = vcmp.eq.s32.totalorder %v11_v14, %v1104_v40 }
 0x144   :  { %840 = vmatpush.xpose.msk.msra.mxu0 %vm163_vm10, %v1041_v48  ;;  %872 = vmatpush.xpose.msk.msra.mxu1 %vm164_vm14, %v1041_v48  ;;  %vm1761_vm10 = vcmp.eq.s32.totalorder %v1091_v20, %v1202_v5  ;;  %vm1762_vm14 = vcmp.eq.s32.totalorder %v1091_v20, %v1204_v6 }
 0x146   :  { %941 = vmatmul.msk.f32.vlgmr.msra.gmra.mxu2 %vm466_vm13, %v1492_v15  ;;  %973 = vmatmul.msk.f32.vlgmr.msra.gmra.mxu3 %vm1758_vm7, %v1495_v17  ;;  %vm1760_vm13 = vcmp.eq.s32.totalorder %v1091_v20, %v1146_v62  ;;  %vm470_vm7 = vcmp.eq.s32.totalorder %v1448_v13, %v1102_v39 }
 0x148   :  { %841 = vmatpush.xpose.msk.msra.mxu0 %vm161_vm6, %v1041_v48  ;;  %873 = vmatpush.xpose.msk.msra.mxu1 %vm162_vm15, %v1041_v48  ;;  %vm471_vm6 = vcmp.eq.s32.totalorder %v1448_v13, %v1104_v40  ;;  %vm93_vm15 = vcmp.eq.s32.totalorder %v11_v14, %v1202_v5 }
 0x14c   :  { %842 = vmatpush.xpose.msk.msra.mxu0 %vm1759_vm8, %v1041_v48  ;;  %874 = vmatpush.xpose.msk.msra.mxu1 %vm1760_vm13, %v1041_v48  ;;  %vm94_vm8 = vcmp.eq.s32.totalorder %v11_v14, %v1204_v6  ;;  %vm472_vm13 = vcmp.eq.s32.totalorder %v1433_v12, %v1102_v39 }
 0x14e   :  { %942 = vmatmul.msk.f32.gmra.mxu2 %vm468_vm5, %v1492_v15  ;;  %974 = vmatmul.msk.f32.gmra.mxu3 %vm469_vm4, %v1495_v17  ;;  %vm473_vm5 = vcmp.eq.s32.totalorder %v1433_v12, %v1104_v40  ;;  %vm95_vm4 = vcmp.eq.s32.totalorder %v1448_v13, %v1202_v5 }
 0x14f   :  { %843 = vmatmul.msk.f32.vlgmr.msra.gmra.mxu0 %vm1761_vm10, %v1520_v18  ;;  %875 = vmatmul.msk.f32.vlgmr.msra.gmra.mxu1 %vm1762_vm14, %v1523_v21  ;;  %vm96_vm10 = vcmp.eq.s32.totalorder %v1448_v13, %v1204_v6  ;;  %vm474_vm14 = vcmp.eq.s32.totalorder %v1385_v11, %v1102_v39 }
 0x156   :  { %943 = vmatmul.msk.f32.gmra.mxu2 %vm470_vm7, %v1492_v15  ;;  %975 = vmatmul.msk.f32.gmra.mxu3 %vm471_vm6, %v1495_v17  ;;  %vm475_vm7 = vcmp.eq.s32.totalorder %v1385_v11, %v1104_v40  ;;  %vm97_vm6 = vcmp.eq.s32.totalorder %v1433_v12, %v1202_v5 }
 0x157   :  { %844 = vmatmul.msk.f32.gmra.mxu0 %vm93_vm15, %v1520_v18  ;;  %876 = vmatmul.msk.f32.gmra.mxu1 %vm94_vm8, %v1523_v21  ;;  %vm98_vm15 = vcmp.eq.s32.totalorder %v1433_v12, %v1204_v6  ;;  %vm99_vm8 = vcmp.eq.s32.totalorder %v1385_v11, %v1202_v5 }
 0x15e   :  { %944 = vmatmul.msk.f32.gmra.mxu2 %vm472_vm13, %v1492_v15  ;;  %976 = vmatmul.msk.f32.gmra.mxu3 %vm473_vm5, %v1495_v17  ;;  %vm100_vm13 = vcmp.eq.s32.totalorder %v1385_v11, %v1204_v6  ;;  %vm1763_vm5 = vcmp.eq.s32.totalorder %v1246_v10, %v1102_v39 }
 0x15f   :  { %845 = vmatmul.msk.f32.gmra.mxu0 %vm95_vm4, %v1520_v18  ;;  %877 = vmatmul.msk.f32.gmra.mxu1 %vm96_vm10, %v1523_v21  ;;  %vm1764_vm4 = vcmp.eq.s32.totalorder %v1246_v10, %v1104_v40  ;;  %vm1765_vm10 = vcmp.eq.s32.totalorder %v1225_v7, %v1102_v39 }
 0x166   :  { %945 = vmatmul.msk.f32.gmra.mxu2 %vm474_vm14, %v1492_v15  ;;  %977 = vmatmul.msk.f32.gmra.mxu3 %vm475_vm7, %v1495_v17  ;;  %vm1766_vm14 = vcmp.eq.s32.totalorder %v1225_v7, %v1104_v40  ;;  %vm1767_vm7 = vcmp.eq.s32.totalorder %v1246_v10, %v1202_v5 }
 0x167   :  { %846 = vmatmul.msk.f32.gmra.mxu0 %vm97_vm6, %v1520_v18  ;;  %878 = vmatmul.msk.f32.gmra.mxu1 %vm98_vm15, %v1523_v21  ;;  %vm1768_vm6 = vcmp.eq.s32.totalorder %v1246_v10, %v1204_v6  ;;  %vm1769_vm15 = vcmp.eq.s32.totalorder %v1222_v9, %v1102_v39 }
 0x16e   :  { %946 = vmatmul.msk.f32.gmra.mxu2 %vm1763_vm5, %v1492_v15  ;;  %978 = vmatmul.msk.f32.gmra.mxu3 %vm1764_vm4, %v1495_v17  ;;  %vm1772_vm5 = vcmp.eq.s32.totalorder %v1219_v8, %v1102_v39  ;;  %vm1773_vm4 = vcmp.eq.s32.totalorder %v1219_v8, %v1104_v40 }
 0x16f   :  { %847 = vmatmul.msk.f32.gmra.mxu0 %vm99_vm8, %v1520_v18  ;;  %879 = vmatmul.msk.f32.gmra.mxu1 %vm100_vm13, %v1523_v21  ;;  %vm1770_vm8 = vcmp.eq.s32.totalorder %v1225_v7, %v1202_v5  ;;  %vm1771_vm13 = vcmp.eq.s32.totalorder %v1225_v7, %v1204_v6 }
 0x176   :  { %947 = vmatmul.msk.f32.gmra.mxu2 %vm1765_vm10, %v1492_v15  ;;  %979 = vmatmul.msk.f32.gmra.mxu3 %vm1766_vm14, %v1495_v17  ;;  %vm1775_vm10 = vcmp.eq.s32.totalorder %v1222_v9, %v1204_v6  ;;  %vm1776_vm14 = vcmp.eq.s32.totalorder %v1200_v4, %v1102_v39 }
 0x177   :  { %848 = vmatmul.msk.f32.gmra.mxu0 %vm1767_vm7, %v1520_v18  ;;  %880 = vmatmul.msk.f32.gmra.mxu1 %vm1768_vm6, %v1523_v21  ;;  %vm1777_vm7 = vcmp.eq.s32.totalorder %v1200_v4, %v1104_v40  ;;  %vm1778_vm6 = vcmp.eq.s32.totalorder %v1219_v8, %v1202_v5 }
 0x17e   :  { %948 = vmatmul.msk.f32.gmra.mxu2 %vm1769_vm15, %v1492_v15  ;;  %980 = vmatmul.msk.f32.gmra.mxu3 %vm481_vm9, %v1495_v17  ;;  %vm1774_vm9 = vcmp.eq.s32.totalorder %v1222_v9, %v1202_v5  ;;  %vm1779_vm15 = vcmp.eq.s32.totalorder %v1219_v8, %v1204_v6 }
 0x17f   :  { %849 = vmatmul.msk.f32.gmra.mxu0 %vm1770_vm8, %v1520_v18  ;;  %881 = vmatmul.msk.f32.gmra.mxu1 %vm1771_vm13, %v1523_v21  ;;  %vm1780_vm8 = vcmp.eq.s32.totalorder %v1189_v3, %v1102_v39  ;;  %vm1781_vm13 = vcmp.eq.s32.totalorder %v1200_v4, %v1202_v5 }
 0x186   :  { %949 = vmatmul.msk.f32.gmra.mxu2 %vm1772_vm5, %v1492_v15  ;;  %981 = vmatmul.msk.f32.gmra.mxu3 %vm1773_vm4, %v1495_v17  ;;  %vm1782_vm5 = vcmp.eq.s32.totalorder %v1200_v4, %v1204_v6  ;;  %vm1784_vm4 = vcmp.eq.s32.totalorder %v1189_v3, %v1204_v6 }
 0x187   :  { %850 = vmatmul.msk.f32.gmra.mxu0 %vm1774_vm9, %v1520_v18  ;;  %882 = vmatmul.msk.f32.gmra.mxu1 %vm1775_vm10, %v1523_v21  ;;  %vm1787_vm9 = vcmp.eq.s32.totalorder %v1174_v2, %v1204_v6  ;;  %vm1788_vm10 = vcmp.eq.s32.totalorder %v1132_v54, %v1102_v39 }
 0x18e   :  { %950 = vmatmul.msk.f32.gmra.mxu2 %vm1776_vm14, %v1492_v15  ;;  %982 = vmatmul.msk.f32.gmra.mxu3 %vm1777_vm7, %v1495_v17  ;;  %vm1790_vm14 = vcmp.eq.s32.totalorder %v1149_v63, %v1202_v5  ;;  %vm1791_vm7 = vcmp.eq.s32.totalorder %v1149_v63, %v1204_v6 }
 0x18f   :  { %851 = vmatmul.msk.f32.gmra.mxu0 %vm1778_vm6, %v1520_v18  ;;  %883 = vmatmul.msk.f32.gmra.mxu1 %vm1779_vm15, %v1523_v21  ;;  %vm1792_vm6 = vcmp.eq.s32.totalorder %v1132_v54, %v1202_v5  ;;  %vm1793_vm15 = vcmp.eq.s32.totalorder %v1132_v54, %v1204_v6 }
 0x196   :  { %951 = vmatmul.msk.f32.gmra.mxu2 %vm1780_vm8, %v1492_v15  ;;  %983 = vmatmul.msk.f32.gmra.mxu3 %vm487_vm11, %v1495_v17  ;;  %vm1783_vm11 = vcmp.eq.s32.totalorder %v1189_v3, %v1202_v5  ;;  %vm1794_vm8 = vcmp.eq.s32.totalorder %v1096_v31, %v1102_v39 }
 0x197   :  { %852 = vmatmul.msk.f32.gmra.mxu0 %vm1781_vm13, %v1520_v18  ;;  %884 = vmatmul.msk.f32.gmra.mxu1 %vm1782_vm5, %v1523_v21  ;;  %vm1797_vm13 = vcmp.eq.s32.totalorder %v1120_v46, %v1204_v6  ;;  %vm1798_vm5 = vcmp.eq.s32.totalorder %v1096_v31, %v1202_v5 }
 0x19e   :  { %952 = vmatmul.msk.f32.gmra.mxu2 %vm488_vm1, %v1492_v15  ;;  %984 = vmatmul.msk.f32.gmra.mxu3 %vm489_vm2, %v1495_v17  ;;  %vm1785_vm1 = vcmp.eq.s32.totalorder %v1149_v63, %v1104_v40  ;;  %vm1786_vm2 = vcmp.eq.s32.totalorder %v1174_v2, %v1202_v5 }
 0x19f   :  { %853 = vmatmul.msk.f32.gmra.mxu0 %vm1783_vm11, %v1520_v18  ;;  %885 = vmatmul.msk.f32.gmra.mxu1 %vm1784_vm4, %v1523_v21  ;;  %vm1799_vm11 = vcmp.eq.s32.totalorder %v1096_v31, %v1204_v6 }
 0x1a6   :  { %953 = vmatmul.msk.f32.gmra.mxu2 %vm490_vm12, %v1492_v15  ;;  %985 = vmatmul.msk.f32.gmra.mxu3 %vm1785_vm1, %v1495_v17  ;;  %vm1789_vm12 = vcmp.eq.s32.totalorder %v1132_v54, %v1104_v40 }
 0x1a7   :  { %854 = vmatmul.msk.f32.gmra.mxu0 %vm1786_vm2, %v1520_v18  ;;  %886 = vmatmul.msk.f32.gmra.mxu1 %vm1787_vm9, %v1523_v21 }
 0x1ae   :  { %954 = vmatmul.msk.f32.gmra.mxu2 %vm1788_vm10, %v1492_v15  ;;  %986 = vmatmul.msk.f32.gmra.mxu3 %vm1789_vm12, %v1495_v17 }
 0x1af   :  { %855 = vmatmul.msk.f32.gmra.mxu0 %vm1790_vm14, %v1520_v18  ;;  %887 = vmatmul.msk.f32.gmra.mxu1 %vm1791_vm7, %v1523_v21 }
 0x1b6   :  { %955 = vmatmul.msk.f32.gmra.mxu2 %vm494_vm3, %v1492_v15  ;;  %987 = vmatmul.msk.f32.gmra.mxu3 %vm495_vm0, %v1495_v17  ;;  %vm1795_vm3 = vcmp.eq.s32.totalorder %v1096_v31, %v1104_v40  ;;  %vm1796_vm0 = vcmp.eq.s32.totalorder %v1120_v46, %v1202_v5 }
 0x1b7   :  { %856 = vmatmul.msk.f32.gmra.mxu0 %vm1792_vm6, %v1520_v18  ;;  %888 = vmatmul.msk.f32.gmra.mxu1 %vm1793_vm15, %v1523_v21 }
 0x1be   :  { %956 = vmatmul.msk.f32.gmra.mxu2 %vm1794_vm8, %v1492_v15  ;;  %988 = vmatmul.msk.f32.gmra.mxu3 %vm1795_vm3, %v1495_v17 }
 0x1bf   :  { %857 = vmatmul.msk.f32.gmra.mxu0 %vm1796_vm0, %v1520_v18  ;;  %889 = vmatmul.msk.f32.gmra.mxu1 %vm1797_vm13, %v1523_v21 }
 0x1c7   :  { %858 = vmatmul.msk.f32.gmra.mxu0 %vm1798_vm5, %v1520_v18  ;;  %890 = vmatmul.msk.f32.gmra.mxu1 %vm1799_vm11, %v1523_v21 }
 0x1c9   :  { %v647_v20 = vpop.f32.mrf.mxu2  ;;  %v712_v23 = vpop.f32.mrf.mxu3 }
 0x1ca   :  { %v713_v24 = vadd.f32 %v712_v23, %v647_v20 }
 0x1cc   :  { %761 = vst [vmem:[#allocation2 + $0x80] sm:$0xff] %v713_v24  ;;  %v272_v26 = vpop.f32.mrf.mxu0  ;;  %v337_v27 = vpop.f32.mrf.mxu1 }
 0x1cd   :  { %v338_v28 = vadd.f32 %v337_v27, %v272_v26 }
 0x1cf   :  { %385 = vst [vmem:[#allocation2] sm:$0xff] %v338_v28 }
 0x1d1   :  { %v650_v29 = vpop.f32.mrf.mxu2  ;;  %v715_v30 = vpop.f32.mrf.mxu3 }
 0x1d2   :  { %v716_v32 = vadd.f32 %v715_v30, %v650_v29 }
 0x1d4   :  { %762 = vst [vmem:[#allocation2 + $0x88] sm:$0xff] %v716_v32  ;;  %v275_v33 = vpop.f32.mrf.mxu0  ;;  %v340_v34 = vpop.f32.mrf.mxu1 }
 0x1d5   :  { %v341_v35 = vadd.f32 %v340_v34, %v275_v33 }
 0x1d7   :  { %386 = vst [vmem:[#allocation2 + $0x8] sm:$0xff] %v341_v35 }
 0x1d9   :  { %v653_v36 = vpop.f32.mrf.mxu2  ;;  %v718_v16 = vpop.f32.mrf.mxu3 }
 0x1da   :  { %v719_v31 = vadd.f32 %v718_v16, %v653_v36 }
 0x1dc   :  { %763 = vst [vmem:[#allocation2 + $0x90] sm:$0xff] %v719_v31  ;;  %v278_v37 = vpop.f32.mrf.mxu0  ;;  %v343_v19 = vpop.f32.mrf.mxu1 }
 0x1dd   :  { %v344_v38 = vadd.f32 %v343_v19, %v278_v37 }
 0x1df   :  { %387 = vst [vmem:[#allocation2 + $0x10] sm:$0xff] %v344_v38 }
 0x1e1   :  { %v656_v39 = vpop.f32.mrf.mxu2  ;;  %v721_v40 = vpop.f32.mrf.mxu3 }
 0x1e2   :  { %v722_v41 = vadd.f32 %v721_v40, %v656_v39 }
 0x1e4   :  { %764 = vst [vmem:[#allocation2 + $0x98] sm:$0xff] %v722_v41  ;;  %v281_v42 = vpop.f32.mrf.mxu0  ;;  %v346_v43 = vpop.f32.mrf.mxu1 }
 0x1e5   :  { %v347_v44 = vadd.f32 %v346_v43, %v281_v42 }
 0x1e7   :  { %388 = vst [vmem:[#allocation2 + $0x18] sm:$0xff] %v347_v44 }
 0x1e9   :  { %v659_v45 = vpop.f32.mrf.mxu2  ;;  %v724_v46 = vpop.f32.mrf.mxu3 }
 0x1ea   :  { %v725_v47 = vadd.f32 %v724_v46, %v659_v45 }
 0x1ec   :  { %765 = vst [vmem:[#allocation2 + $0xa0] sm:$0xff] %v725_v47  ;;  %v284_v48 = vpop.f32.mrf.mxu0  ;;  %v349_v49 = vpop.f32.mrf.mxu1 }
 0x1ed   :  { %v350_v50 = vadd.f32 %v349_v49, %v284_v48 }
 0x1ef   :  { %389 = vst [vmem:[#allocation2 + $0x20] sm:$0xff] %v350_v50 }
 0x1f1   :  { %v662_v51 = vpop.f32.mrf.mxu2  ;;  %v727_v52 = vpop.f32.mrf.mxu3 }
 0x1f2   :  { %v728_v53 = vadd.f32 %v727_v52, %v662_v51 }
 0x1f4   :  { %766 = vst [vmem:[#allocation2 + $0xa8] sm:$0xff] %v728_v53  ;;  %v287_v54 = vpop.f32.mrf.mxu0  ;;  %v352_v55 = vpop.f32.mrf.mxu1 }
 0x1f5   :  { %v353_v56 = vadd.f32 %v352_v55, %v287_v54 }
 0x1f7   :  { %390 = vst [vmem:[#allocation2 + $0x28] sm:$0xff] %v353_v56 }
 0x1f9   :  { %v665_v22 = vpop.f32.mrf.mxu2  ;;  %v730_v25 = vpop.f32.mrf.mxu3 }
 0x1fa   :  { %v731_v57 = vadd.f32 %v730_v25, %v665_v22 }
 0x1fc   :  { %767 = vst [vmem:[#allocation2 + $0xb0] sm:$0xff] %v731_v57  ;;  %v290_v58 = vpop.f32.mrf.mxu0  ;;  %v355_v59 = vpop.f32.mrf.mxu1 }
 0x1fd   :  { %v356_v60 = vadd.f32 %v355_v59, %v290_v58 }
 0x1ff   :  { %391 = vst [vmem:[#allocation2 + $0x30] sm:$0xff] %v356_v60 }
 0x201   :  { %v668_v61 = vpop.f32.mrf.mxu2  ;;  %v733_v62 = vpop.f32.mrf.mxu3 }
 0x202   :  { %v734_v63 = vadd.f32 %v733_v62, %v668_v61 }
 0x204   :  { %768 = vst [vmem:[#allocation2 + $0xb8] sm:$0xff] %v734_v63  ;;  %v293_v0 = vpop.f32.mrf.mxu0  ;;  %v358_v1 = vpop.f32.mrf.mxu1 }
 0x205   :  { %v359_v2 = vadd.f32 %v358_v1, %v293_v0 }
 0x207   :  { %392 = vst [vmem:[#allocation2 + $0x38] sm:$0xff] %v359_v2 }
 0x209   :  { %v671_v3 = vpop.f32.mrf.mxu2  ;;  %v736_v4 = vpop.f32.mrf.mxu3 }
 0x20a   :  { %v737_v5 = vadd.f32 %v736_v4, %v671_v3 }
 0x20c   :  { %769 = vst [vmem:[#allocation2 + $0xc0] sm:$0xff] %v737_v5  ;;  %v296_v6 = vpop.f32.mrf.mxu0  ;;  %v361_v8 = vpop.f32.mrf.mxu1 }
 0x20d   :  { %v362_v9 = vadd.f32 %v361_v8, %v296_v6 }
 0x20f   :  { %393 = vst [vmem:[#allocation2 + $0x40] sm:$0xff] %v362_v9 }
 0x211   :  { %v674_v7 = vpop.f32.mrf.mxu2  ;;  %v739_v10 = vpop.f32.mrf.mxu3 }
 0x212   :  { %v740_v11 = vadd.f32 %v739_v10, %v674_v7 }
 0x214   :  { %770 = vst [vmem:[#allocation2 + $0xc8] sm:$0xff] %v740_v11  ;;  %v299_v12 = vpop.f32.mrf.mxu0  ;;  %v364_v13 = vpop.f32.mrf.mxu1 }
 0x215   :  { %v365_v14 = vadd.f32 %v364_v13, %v299_v12 }
 0x217   :  { %394 = vst [vmem:[#allocation2 + $0x48] sm:$0xff] %v365_v14 }
 0x219   :  { %v677_v15 = vpop.f32.mrf.mxu2  ;;  %v742_v17 = vpop.f32.mrf.mxu3 }
 0x21a   :  { %v743_v18 = vadd.f32 %v742_v17, %v677_v15 }
 0x21c   :  { %771 = vst [vmem:[#allocation2 + $0xd0] sm:$0xff] %v743_v18  ;;  %v302_v21 = vpop.f32.mrf.mxu0  ;;  %v367_v20 = vpop.f32.mrf.mxu1 }
 0x21d   :  { %v368_v23 = vadd.f32 %v367_v20, %v302_v21 }
 0x21f   :  { %395 = vst [vmem:[#allocation2 + $0x50] sm:$0xff] %v368_v23 }
 0x221   :  { %v680_v24 = vpop.f32.mrf.mxu2  ;;  %v745_v26 = vpop.f32.mrf.mxu3 }
 0x222   :  { %v746_v27 = vadd.f32 %v745_v26, %v680_v24 }
 0x224   :  { %772 = vst [vmem:[#allocation2 + $0xd8] sm:$0xff] %v746_v27  ;;  %v305_v28 = vpop.f32.mrf.mxu0  ;;  %v370_v29 = vpop.f32.mrf.mxu1 }
 0x225   :  { %v371_v30 = vadd.f32 %v370_v29, %v305_v28 }
 0x227   :  { %396 = vst [vmem:[#allocation2 + $0x58] sm:$0xff] %v371_v30 }
 0x229   :  { %v683_v32 = vpop.f32.mrf.mxu2  ;;  %v748_v33 = vpop.f32.mrf.mxu3 }
 0x22a   :  { %v749_v34 = vadd.f32 %v748_v33, %v683_v32 }
 0x22c   :  { %773 = vst [vmem:[#allocation2 + $0xe0] sm:$0xff] %v749_v34  ;;  %v308_v35 = vpop.f32.mrf.mxu0  ;;  %v373_v36 = vpop.f32.mrf.mxu1 }
 0x22d   :  { %v374_v16 = vadd.f32 %v373_v36, %v308_v35 }
 0x22f   :  { %397 = vst [vmem:[#allocation2 + $0x60] sm:$0xff] %v374_v16 }
 0x231   :  { %v686_v31 = vpop.f32.mrf.mxu2  ;;  %v751_v37 = vpop.f32.mrf.mxu3 }
 0x232   :  { %v752_v19 = vadd.f32 %v751_v37, %v686_v31 }
 0x234   :  { %774 = vst [vmem:[#allocation2 + $0xe8] sm:$0xff] %v752_v19  ;;  %v311_v38 = vpop.f32.mrf.mxu0  ;;  %v376_v39 = vpop.f32.mrf.mxu1 }
 0x235   :  { %v377_v40 = vadd.f32 %v376_v39, %v311_v38 }
 0x237   :  { %398 = vst [vmem:[#allocation2 + $0x68] sm:$0xff] %v377_v40 }
 0x239   :  { %v689_v41 = vpop.f32.mrf.mxu2  ;;  %v754_v42 = vpop.f32.mrf.mxu3 }
 0x23a   :  { %v755_v43 = vadd.f32 %v754_v42, %v689_v41 }
 0x23c   :  { %775 = vst [vmem:[#allocation2 + $0xf0] sm:$0xff] %v755_v43  ;;  %v314_v44 = vpop.f32.mrf.mxu0  ;;  %v379_v45 = vpop.f32.mrf.mxu1 }
 0x23d   :  { %v380_v46 = vadd.f32 %v379_v45, %v314_v44 }
 0x23f   :  { %399 = vst [vmem:[#allocation2 + $0x70] sm:$0xff] %v380_v46 }
 0x241   :  { %v692_v47 = vpop.f32.mrf.mxu2  ;;  %v757_v48 = vpop.f32.mrf.mxu3 }
 0x242   :  { %v758_v49 = vadd.f32 %v757_v48, %v692_v47 }
 0x244   :  { %776 = vst [vmem:[#allocation2 + $0xf8] sm:$0xff] %v758_v49  ;;  %v317_v50 = vpop.f32.mrf.mxu0  ;;  %v382_v51 = vpop.f32.mrf.mxu1 }
 0x245   :  { %v383_v52 = vadd.f32 %v382_v51, %v317_v50 }
 0x247   :  { %400 = vst [vmem:[#allocation2 + $0x78] sm:$0xff] %v383_v52 }
 0x248   :  { %789 = dma.vmem_to_hbm [thread:$0]  %s782_s14, 4096, %s784_s17, [#allocation3], %s1043_s18, %s1043_s18, %s1044_s19  }
 0x249   :  { %1038 = dma.done.wait [#allocation3], 4096  }
 0x24a   :  { %1039 = vsyncadd [#allocation3], 4294963200 }
 0x24b   :  { %794 = vsyncpa [#allocation3], 1 }

</bundles_post_ra>
